<compile_context>
chip_gen: v5e
topology: v5e:2x2
jax: 0.10.0
libtpu: 0.0.40
codegen_flags: <defaults>
</compile_context>

<pallas_src>
import functools

import jax
import jax.numpy as jnp
from jax.experimental import pallas as pl
from jax.experimental.pallas import tpu as pltpu


def _made_mlp_kernel(depth, compute_dtype, *refs):
    """refs = [x_ref, (wm0, b0), (wm1, b1), ..., o_ref].

    x_ref : (fan_in0, TB) activations, batch on the lane axis.
    wmL   : (fan_out, fan_in) pre-masked weight, original PyTorch layout.
    bL    : (fan_out, 1) bias in f32.
    o_ref : (in_num * out_num, TB).
    """
    x_ref = refs[0]
    o_ref = refs[-1]
    x = x_ref[...]
    n_layers = depth + 1
    for li in range(n_layers):
        wm = refs[1 + 2 * li][...]             # (fan_out, fan_in), mask folded in
        b = refs[2 + 2 * li][...]              # (fan_out, 1) broadcasts over lanes
        x_inp = x
        y = jnp.dot(wm, x, preferred_element_type=jnp.float32) + b
        if 0 < li < depth:                     # residual only on mid layers
            y = y + x_inp.astype(jnp.float32)
        # BASE_REAL_TYPE path: tanh after every layer.
        x = jnp.tanh(y).astype(compute_dtype)
    o_ref[...] = x.astype(o_ref.dtype)


def made_mlp_forward(x, params, masks, *, in_num, out_num, depth, width,
                     tb=256, compute_dtype=None):
    del width  # shapes are taken from params/masks
    orig_dtype = x.dtype
    lead = x.shape[:-1]
    f_in = x.shape[-1]
    assert f_in <= in_num
    B = 1
    for d in lead:
        B *= d
    cdt = orig_dtype if compute_dtype is None else compute_dtype

    # Batch-on-lanes layout: (features, batch).
    xT = jnp.transpose(x.reshape(B, f_in)).astype(cdt)          # (f_in, B)

    n_steps = -(-B // tb)
    b_pad = n_steps * tb
    assert tb % 128 == 0 or n_steps == 1, "tb must be a multiple of 128 (lane axis)"
    if b_pad != B:
        xT = jnp.pad(xT, ((0, 0), (0, b_pad - B)))              # zero batch pad

    in_specs = [pl.BlockSpec((f_in, tb), lambda i: (0, i))]
    flat_args = [xT]
    for li in range(depth + 1):
        w, b = params[li]
        wm = (w * masks[li]).astype(cdt)      # fold mask into weight on host
        if li == 0 and f_in < in_num:
            # Columns multiplying the (implicit) zero-padded features of x
            # contribute nothing -> slice them off instead of padding x.
            wm = wm[:, :f_in]
        if 0 < li < depth:
            assert wm.shape[0] == wm.shape[1], "residual needs fan_in == fan_out"
        b2 = b.reshape(-1, 1).astype(jnp.float32)
        fo, fi = wm.shape
        flat_args += [wm, b2]
        in_specs += [
            pl.BlockSpec((fo, fi), lambda i: (0, 0)),   # constant block: fetched once
            pl.BlockSpec((fo, 1), lambda i: (0, 0)),
        ]

    out_dim = in_num * out_num
    out = pl.pallas_call(
        functools.partial(_made_mlp_kernel, depth, cdt),
        out_shape=jax.ShapeDtypeStruct((out_dim, b_pad), orig_dtype),
        grid_spec=pltpu.PrefetchScalarGridSpec(
            num_scalar_prefetch=0,
            grid=(n_steps,),
            in_specs=in_specs,
            out_specs=pl.BlockSpec((out_dim, tb), lambda i: (0, i)),
        ),
        compiler_params=pltpu.CompilerParams(
            dimension_semantics=("parallel",)),
    )(*flat_args)

    if b_pad != B:
        out = out[:, :B]
    # Glue: back to (..., in_num, out_num).
    return jnp.transpose(out).reshape(*lead, in_num, out_num)


def build_masks(in_num, out_num, depth, width, dtype):
    cond_in_num = in_num - 1
    allowed = []
    for in_idx in range(cond_in_num):
        rep = width // cond_in_num + (
            1 if (cond_in_num - in_idx - 1 < width % cond_in_num) else 0)
        allowed += [in_idx] * rep
    allowed = jnp.array(allowed, dtype=jnp.int32)                        # (width,)
    start_mask = (allowed[:, None] >= jnp.arange(in_num)[None, :]).astype(dtype)
    mid_mask = (allowed[:, None] >= allowed[None, :]).astype(dtype)
    end_mask = ((jnp.arange(in_num * out_num) // out_num)[:, None]
                > allowed[None, :]).astype(dtype)
    return [start_mask] + [mid_mask] * (depth - 1) + [end_mask]


if __name__ == "__main__":
    in_num, out_num, depth, width = 8, 2, 2, 32
    B = 512                       # 2 parallel grid steps at tb=256 (keeps both
                                  # v7x TensorCores busy); still tiny overall.
    dtype = jnp.float32           # BASE_REAL_TYPE assumed float32

    masks = build_masks(in_num, out_num, depth, width, dtype)

    # Deterministic parameter init (PyTorch nn.Linear-style uniform bounds).
    in_nums = [in_num] + [width] * depth
    out_nums = [width] * depth + [out_num * in_num]
    key = jax.random.PRNGKey(0)
    params = []
    for li in range(depth + 1):
        key, kw, kb = jax.random.split(key, 3)
        bound = 1.0 / float(in_nums[li]) ** 0.5
        w = jax.random.uniform(kw, (out_nums[li], in_nums[li]), dtype, -bound, bound)
        b = jax.random.uniform(kb, (out_nums[li],), dtype, -bound, bound)
        params.append((w, b))

    key, kx = jax.random.split(key)
    # in_num - 1 features exercises the "pad to in_num" semantics (handled by
    # slicing layer-0 weight columns instead of padding x).
    x = jax.random.normal(kx, (B, in_num - 1), dtype)

    y = made_mlp_forward(x, params, masks, in_num=in_num, out_num=out_num,
                         depth=depth, width=width, tb=256)
    # On v6e / v7x, pass compute_dtype=jnp.bfloat16 for the MXU-native path.
    y = jax.block_until_ready(y)

    # Pure-JAX reference, identical op order to the PyTorch module.
    def ref_forward(xr):
        if xr.shape[-1] < in_num:
            xr = jnp.concatenate(
                [xr, jnp.zeros((*xr.shape[:-1], in_num - xr.shape[-1]), xr.dtype)], -1)
        for li in range(depth + 1):
            w, b = params[li]
            x_inp = xr
            xr = xr @ (w * masks[li]).T + b
            if 0 < li < depth:
                xr = xr + x_inp
            xr = jnp.tanh(xr)
        return xr.reshape(*xr.shape[:-1], in_num, out_num)

    y_ref = ref_forward(x)
    assert y.shape == (B, in_num, out_num)
    assert jnp.allclose(y, y_ref, atol=2e-3, rtol=2e-3), \
        float(jnp.max(jnp.abs(y - y_ref)))
    print("KERNEL_OK")
</pallas_src>

<mosaic_0001>
module attributes {stable_mosaic.version = 11 : i64} {
  func.func @_made_mlp_kernel(%arg0: i32, %arg1: memref<7x256xf32, #tpu.memory_space<vmem>>, %arg2: memref<32x7xf32, #tpu.memory_space<vmem>>, %arg3: memref<32x1xf32, #tpu.memory_space<vmem>>, %arg4: memref<32x32xf32, #tpu.memory_space<vmem>>, %arg5: memref<32x1xf32, #tpu.memory_space<vmem>>, %arg6: memref<16x32xf32, #tpu.memory_space<vmem>>, %arg7: memref<16x1xf32, #tpu.memory_space<vmem>>, %arg8: memref<16x256xf32, #tpu.memory_space<vmem>>) attributes {dimension_semantics = [#tpu.dimension_semantics<parallel>], iteration_bounds = array<i64: 2>, scalar_prefetch = 0 : i64, scratch_operands = 0 : i64, tpu.core_type = #tpu.core_type<tc>, window_params = [{transform_indices = @transform_0, window_bounds = array<i64: 7, 256>}, {pipeline_mode = #tpu.pipeline_mode<synchronous>, transform_indices = @transform_1, window_bounds = array<i64: 32, 7>}, {pipeline_mode = #tpu.pipeline_mode<synchronous>, transform_indices = @transform_2, window_bounds = array<i64: 32, 1>}, {pipeline_mode = #tpu.pipeline_mode<synchronous>, transform_indices = @transform_3, window_bounds = array<i64: 32, 32>}, {pipeline_mode = #tpu.pipeline_mode<synchronous>, transform_indices = @transform_4, window_bounds = array<i64: 32, 1>}, {pipeline_mode = #tpu.pipeline_mode<synchronous>, transform_indices = @transform_5, window_bounds = array<i64: 16, 32>}, {pipeline_mode = #tpu.pipeline_mode<synchronous>, transform_indices = @transform_6, window_bounds = array<i64: 16, 1>}, {transform_indices = @transform_7, window_bounds = array<i64: 16, 256>}]} {
    %c0 = arith.constant 0 : index
    %c0_0 = arith.constant 0 : index
    %0 = vector.load %arg1[%c0, %c0_0] : memref<7x256xf32, #tpu.memory_space<vmem>>, vector<7x256xf32>
    %c0_1 = arith.constant 0 : index
    %c0_2 = arith.constant 0 : index
    %1 = vector.load %arg2[%c0_1, %c0_2] : memref<32x7xf32, #tpu.memory_space<vmem>>, vector<32x7xf32>
    %c0_3 = arith.constant 0 : index
    %c0_4 = arith.constant 0 : index
    %2 = vector.load %arg3[%c0_3, %c0_4] : memref<32x1xf32, #tpu.memory_space<vmem>>, vector<32x1xf32>
    %cst = arith.constant dense<0.000000e+00> : vector<32x256xf32>
    %3 = tpu.matmul %1, %0, %cst {dimension_numbers = #tpu.dot_dimension_numbers<[1], [0], [0], [1], [0, 0, 1, 1], [], []>} : vector<32x7xf32>, vector<7x256xf32>, vector<32x256xf32> -> vector<32x256xf32>
    %4 = vector.broadcast %2 : vector<32x1xf32> to vector<32x256xf32>
    %5 = arith.addf %3, %4 : vector<32x256xf32>
    %6 = math.tanh %5 : vector<32x256xf32>
    %c0_5 = arith.constant 0 : index
    %c0_6 = arith.constant 0 : index
    %7 = vector.load %arg4[%c0_5, %c0_6] : memref<32x32xf32, #tpu.memory_space<vmem>>, vector<32x32xf32>
    %c0_7 = arith.constant 0 : index
    %c0_8 = arith.constant 0 : index
    %8 = vector.load %arg5[%c0_7, %c0_8] : memref<32x1xf32, #tpu.memory_space<vmem>>, vector<32x1xf32>
    %cst_9 = arith.constant dense<0.000000e+00> : vector<32x256xf32>
    %9 = tpu.matmul %7, %6, %cst_9 {dimension_numbers = #tpu.dot_dimension_numbers<[1], [0], [0], [1], [0, 0, 1, 1], [], []>} : vector<32x32xf32>, vector<32x256xf32>, vector<32x256xf32> -> vector<32x256xf32>
    %10 = vector.broadcast %8 : vector<32x1xf32> to vector<32x256xf32>
    %11 = arith.addf %9, %10 : vector<32x256xf32>
    %12 = arith.addf %11, %6 : vector<32x256xf32>
    %13 = math.tanh %12 : vector<32x256xf32>
    %c0_10 = arith.constant 0 : index
    %c0_11 = arith.constant 0 : index
    %14 = vector.load %arg6[%c0_10, %c0_11] : memref<16x32xf32, #tpu.memory_space<vmem>>, vector<16x32xf32>
    %c0_12 = arith.constant 0 : index
    %c0_13 = arith.constant 0 : index
    %15 = vector.load %arg7[%c0_12, %c0_13] : memref<16x1xf32, #tpu.memory_space<vmem>>, vector<16x1xf32>
    %cst_14 = arith.constant dense<0.000000e+00> : vector<16x256xf32>
    %16 = tpu.matmul %14, %13, %cst_14 {dimension_numbers = #tpu.dot_dimension_numbers<[1], [0], [0], [1], [0, 0, 1, 1], [], []>} : vector<16x32xf32>, vector<32x256xf32>, vector<16x256xf32> -> vector<16x256xf32>
    %17 = vector.broadcast %15 : vector<16x1xf32> to vector<16x256xf32>
    %18 = arith.addf %16, %17 : vector<16x256xf32>
    %19 = math.tanh %18 : vector<16x256xf32>
    %c0_15 = arith.constant 0 : index
    %c0_16 = arith.constant 0 : index
    %20 = vector.load %arg8[%c0_15, %c0_16] : memref<16x256xf32, #tpu.memory_space<vmem>>, vector<16x256xf32>
    tpu.vector_store %arg8[%c0_15, %c0_16], %19 {strides = array<i32>} : memref<16x256xf32, #tpu.memory_space<vmem>>, vector<16x256xf32>,
    return
  }
  func.func @transform_0(%arg0: i32) -> (i32, i32) {
    %c0_i32 = arith.constant 0 : i32
    %c0_i32_0 = arith.constant 0 : i32
    return %c0_i32, %arg0 : i32, i32
  }
  func.func @transform_1(%arg0: i32) -> (i32, i32) {
    %c0_i32 = arith.constant 0 : i32
    %c0_i32_0 = arith.constant 0 : i32
    %c0_i32_1 = arith.constant 0 : i32
    return %c0_i32, %c0_i32_0 : i32, i32
  }
  func.func @transform_2(%arg0: i32) -> (i32, i32) {
    %c0_i32 = arith.constant 0 : i32
    %c0_i32_0 = arith.constant 0 : i32
    %c0_i32_1 = arith.constant 0 : i32
    return %c0_i32, %c0_i32_0 : i32, i32
  }
  func.func @transform_3(%arg0: i32) -> (i32, i32) {
    %c0_i32 = arith.constant 0 : i32
    %c0_i32_0 = arith.constant 0 : i32
    %c0_i32_1 = arith.constant 0 : i32
    return %c0_i32, %c0_i32_0 : i32, i32
  }
  func.func @transform_4(%arg0: i32) -> (i32, i32) {
    %c0_i32 = arith.constant 0 : i32
    %c0_i32_0 = arith.constant 0 : i32
    %c0_i32_1 = arith.constant 0 : i32
    return %c0_i32, %c0_i32_0 : i32, i32
  }
  func.func @transform_5(%arg0: i32) -> (i32, i32) {
    %c0_i32 = arith.constant 0 : i32
    %c0_i32_0 = arith.constant 0 : i32
    %c0_i32_1 = arith.constant 0 : i32
    return %c0_i32, %c0_i32_0 : i32, i32
  }
  func.func @transform_6(%arg0: i32) -> (i32, i32) {
    %c0_i32 = arith.constant 0 : i32
    %c0_i32_0 = arith.constant 0 : i32
    %c0_i32_1 = arith.constant 0 : i32
    return %c0_i32, %c0_i32_0 : i32, i32
  }
  func.func @transform_7(%arg0: i32) -> (i32, i32) {
    %c0_i32 = arith.constant 0 : i32
    %c0_i32_0 = arith.constant 0 : i32
    return %c0_i32, %arg0 : i32, i32
  }
}

</mosaic_0001>

<bundles_post_ra>
// kernel: tpu_custom_call.1
= control target key start
LH: loop header
LB: loop body
LE: loop exit
PB: predicated region body
PF: predicated region fallthrough
CT: control target
= control target key end

     0   :  { %12 = vsyncpa [#allocation3], 0  ;;  %s1064_s0 = inlined_call_operand.vmem [shape: f32[7,512], index: 0, kind: input, shape index: {}]   ;;  %s1065_s1 = inlined_call_operand.vmem [shape: f32[32,7], index: 1, kind: input, shape index: {}]   ;;  %s1066_s2 = inlined_call_operand.vmem [shape: f32[32,1], index: 2, kind: input, shape index: {}]   ;;  %s1067_s3 = inlined_call_operand.vmem [shape: f32[32,32], index: 3, kind: input, shape index: {}]   ;;  %s1068_s4 = inlined_call_operand.vmem [shape: f32[32,1], index: 4, kind: input, shape index: {}]   ;;  %s1069_s5 = inlined_call_operand.vmem [shape: f32[16,32], index: 5, kind: input, shape index: {}]   ;;  %s1070_s6 = inlined_call_operand.vmem [shape: f32[16,1], index: 6, kind: input, shape index: {}]   ;;  %s1071_s7 = inlined_call_operand.hbm [shape: f32[16,512], index: 7, kind: output, shape index: {}]  }
   0x1   :  { %14 = vsyncpa [#allocation3 + $0x1], 0  ;;  %s900_s24 = smov 0   ;;  %s902_s25 = smov 0  }
   0x2   :  { %s904_s26 = smov 0   ;;  %s906_s27 = smov 0  }
   0x3 LB: > { %s921_s28 = sadd.s32 4294967295, %s854_s27   ;;  %s663_s29 = sadd.s32 4294967294, %s854_s27   ;;  %s854_s27 = sphi %s906_s27, %s1077_s27   ;;  %s850_s26 = sphi %s904_s26, %s1076_s26   ;;  %s846_s25 = sphi %s902_s25, %s1075_s25   ;;  %s842_s24 = sphi %s900_s24, %s1074_s24  }
   0x4   : > { %s925_s30 = sadd.s32 1, %s854_s27   ;;  %s179_s8 = sadd.s32 1, %s850_s26 }
   0x5   : > { %s176_s9 = ssub.s32 %s854_s27, %s925_s30  ;;  %p189_p0 = scmp.ne.s32.totalorder %s850_s26, %s846_s25 }
   0x6   : > { %p177_p1 = scmp.eq.s32.totalorder %s176_s9, 0  ;;  %p190_p2 = scmp.eq.s32.totalorder %s921_s28, 1 }
   0x7   : > { %p195_p3 = scmp.ne.s32.totalorder %s846_s25, %s842_s24  ;;  %p196_p4 = scmp.eq.s32.totalorder %s663_s29, 1 }
   0x8   : > { %s936_s10 = scalar_select %p177_p1, %s850_s26, %s179_s8  }
   0x9   : > { %p938_p5 = por %p190_p2, %p189_p0  ;;  %p942_p6 = por %p196_p4, %p195_p3 }
   0xa   : > { %p666_p7 = scmp.ge.s32.totalorder %s854_s27, 1  ;;  %p241_p8 = scmp.lt.s32.totalorder %s854_s27, 3 }
   0xc   : > { %p242_p9 = pnand %p666_p7, %p241_p8 }
   0xd   : > { %s668_s13 = sshll.u32 (!%p242_p9), %s921_s28, 1  ;;  %s270_s16 = sand.u32 (!%p242_p9), 1, %s846_s25  }
   0xe   : > { %245 = sbr.rel (%p242_p9) target bundleno = 512 (0x200), region = 48  ;;  %p274_p10 = scmp.lt.s32.totalorder (!%p242_p9), %s668_s13, 3 }
   0xf   : > { %s667_s17 = sshll.u32 (!%p242_p9), %s270_s16, 5  ;;  %s812_s15 = scalar_lea.hbm (!%p242_p9), %s1071_s7, 64 }
  0x10   : > { %s272_s22 = scalar_lea.vmem (!%p242_p9), [#allocation2], %s667_s17 }
  0x11   : > { %s598_s23 = sshll.u32 (!%p242_p9), %s272_s22, 4  ;;  %s599_s23 = int_to_ptr.vmem [resolvable:$true] %s598_s23 }
  0x13   : > { %v287_v0 = vld [vmem:[%s1066_s2 + $0x8] sm:$0xff]  ;;  %v856_v1 = vmov 0   ;;  %v289_v2 = vld [vmem:[%s1066_s2 + $0x18] sm:$0xff]  ;;  %s1079_s13 = smov (!%p274_p10, %s668_s13), 3  ;;  %vm323_vm0 = vcmask 1046528   ;;  %v282_v3 = vld [vmem:[%s1065_s1] sm:$0xff] }
  0x14   : > { %750 = vset.pattern.permute.xlu1 %v856_v1  ;;  %749 = vset.pattern.permute.xlu0 %v856_v1  ;;  %s669_s18 = sshll.u32 %s1079_s13, 3  ;;  %vm310_vm1 = vcmask 56320   ;;  %v286_v4 = vld [vmem:[%s1066_s2] sm:$0xff]  ;;  %v288_v7 = vld [vmem:[%s1066_s2 + $0x10] sm:$0xff]  ;;  %v283_v8 = vld [vmem:[%s1065_s1 + $0x8] sm:$0xff]  ;;  %vm424_vm2 = vcmask 261120  }
  0x15   : > { %297 = vperm.xlu1 %750, %v287_v0   ;;  %307 = vperm.xlu0 %749, %v289_v2   ;;  %s277_s21 = scalar_lea.vmem %s1064_s0, %s669_s18  ;;  %v401_v9 = vld [vmem:[%s1068_s4 + $0x8] sm:$0xff]  ;;  %v400_v10 = vld [vmem:[%s1068_s4] sm:$0xff]  ;;  %v284_v11 = vld [vmem:[%s1065_s1 + $0x10] sm:$0xff]  ;;  %s697_s18 = sshll.u32 %s921_s28, 4 }
  0x16   : > { %751 = vset.pattern.permute.xlu2 %v856_v1  ;;  %v280_v5 = vld [vmem:[%s277_s21] sm:$0x7f]  ;;  %v281_v6 = vld [vmem:[%s277_s21 + $0x8] sm:$0x7f]  ;;  %v285_v13 = vld [vmem:[%s1065_s1 + $0x18] sm:$0xff]  ;;  %s597_s21 = scalar_lea.hbm %s1071_s7, %s697_s18  ;;  %s586_s28 = scalar_lea.sflag [#allocation3], %s270_s16 }
  0x17   : > { %670 = vmatpush.msk.msra.mxu0 %vm323_vm0, %v280_v5  ;;  %675 = vmatpush.msk.msra.mxu1 %vm323_vm0, %v281_v6  ;;  %v514_v12 = vld [vmem:[%s1070_s6 + $0x8] sm:$0xff]  ;;  %v403_v36 = vld [vmem:[%s1068_s4 + $0x18] sm:$0xff]  ;;  %v396_v41 = vld [vmem:[%s1067_s3] sm:$0xff]  ;;  %s600_s29 = sshll.u32 %s597_s21, 4  ;;  %s601_s29 = int_to_ptr.hbm [resolvable:$true] %s600_s29 }
  0x18   : > { %671 = vmatmul.msk.f32.vlgmr.msra.gmra.mxu0 %vm310_vm1, %v282_v3  ;;  %676 = vmatmul.msk.f32.vlgmr.msra.gmra.mxu1 %vm310_vm1, %v282_v3  ;;  %v402_v44 = vld [vmem:[%s1068_s4 + $0x10] sm:$0xff]  ;;  %v397_v45 = vld [vmem:[%s1067_s3 + $0x8] sm:$0xff]  ;;  %v513_v46 = vld [vmem:[%s1070_s6] sm:$0xff]  ;;  %s806_s8 = sshra.s32 %s601_s29, 4  ;;  %s807_s8 = int_to_ptr.hbm [resolvable:$true] %s806_s8 }
  0x19   : > { %421 = vperm.xlu2 %751, %v403_v36   ;;  %v398_v47 = vld [vmem:[%s1067_s3 + $0x10] sm:$0xff]  ;;  %v399_v48 = vld [vmem:[%s1067_s3 + $0x18] sm:$0xff]  ;;  %s808_s9 = scalar_lea.hbm %s807_s8, 32  ;;  %p813_p0 = scmp.lt.s32.totalorder %s807_s8, %s1071_s7 }
  0x1a   : > { %p809_p11 = scmp.ne.s32.totalorder %s807_s8, %s808_s9  ;;  %p814_p1 = scmp.lt.s32.totalorder %s812_s15, %s808_s9 }
  0x1c   : > { %p810_p12 = pnand %p809_p11, %p938_p5  ;;  %p815_p2 = por %p814_p1, %p813_p0 }
  0x1d   : > { %292 = vperm.xlu1 %750, %v286_v4   ;;  %302 = vperm.xlu0 %749, %v288_v7  }
  0x1e   : > { %p811_p13 = pneg %p810_p12 }
  0x20   : > { %672 = vmatmul.msk.f32.gmra.mxu0 %vm310_vm1, %v283_v8  ;;  %677 = vmatmul.msk.f32.gmra.mxu1 %vm310_vm1, %v283_v8  ;;  %p816_p3 = pnand %p815_p2, %p811_p13 }
  0x21   : > { %416 = vperm.xlu2 %751, %v402_v44  }
  0x25   : > { %411 = vperm.xlu0 %749, %v401_v9   ;;  %406 = vperm.xlu1 %750, %v400_v10  }
  0x28   : > { %673 = vmatmul.msk.f32.gmra.mxu0 %vm310_vm1, %v284_v11  ;;  %678 = vmatmul.msk.f32.gmra.mxu1 %vm310_vm1, %v284_v11 }
  0x29   : > { %517 = vperm.xlu2 %751, %v513_v46  }
  0x2d   : > { %522 = vperm.xlu0 %749, %v514_v12  }
  0x30   : > { %674 = vmatmul.msk.f32.gmra.mxu0 %vm310_vm1, %v285_v13  ;;  %679 = vmatmul.msk.f32.gmra.mxu1 %vm310_vm1, %v285_v13 }
  0x73   : > { %v422_v53 = vpop.permute.xlu2 %421 }
  0x7b   : > { %v417_v56 = vpop.permute.xlu2 %416 }
  0x87   : > { %v308_v18 = vpop.permute.xlu0 %307  ;;  %v298_v19 = vpop.permute.xlu1 %297 }
  0x8f   : > { %v303_v22 = vpop.permute.xlu0 %302  ;;  %v293_v28 = vpop.permute.xlu1 %292 }
  0x95   : > { %v347_v14 = vpop.f32.mrf.mxu0  ;;  %v376_v15 = vpop.f32.mrf.mxu1 }
  0x96   : > { %v348_v32 = vadd.f32 %v347_v14, %v293_v28  ;;  %v377_v33 = vadd.f32 %v376_v15, %v293_v28 }
  0x97   : > { %v412_v58 = vpop.permute.xlu0 %411  ;;  %v407_v0 = vpop.permute.xlu1 %406 }
  0x9d   : > { %v350_v16 = vpop.f32.mrf.mxu0  ;;  %v379_v17 = vpop.f32.mrf.mxu1 }
  0x9e   : > { %v351_v30 = vadd.f32 %v350_v16, %v298_v19  ;;  %v380_v31 = vadd.f32 %v379_v17, %v298_v19 }
  0x9f   : > { %v523_v28 = vpop.permute.xlu0 %522 }
  0xa5   : > { %v353_v20 = vpop.f32.mrf.mxu0  ;;  %v382_v21 = vpop.f32.mrf.mxu1 }
  0xa6   : > { %v354_v25 = vadd.f32 %v353_v20, %v303_v22  ;;  %v383_v29 = vadd.f32 %v382_v21, %v303_v22  ;;  %v511_v20 = vld [vmem:[%s1069_s5] sm:$0xff]  ;;  %v512_v21 = vld [vmem:[%s1069_s5 + $0x8] sm:$0xff] }
  0xad   : > { %v356_v23 = vpop.f32.mrf.mxu0  ;;  %v385_v24 = vpop.f32.mrf.mxu1 }
  0xae   : > { %v357_v26 = vadd.f32 %v356_v23, %v308_v18  ;;  %v386_v27 = vadd.f32 %v385_v24, %v308_v18  ;;  %v518_v23 = vpop.permute.xlu2 %517 }
  0xb0   : > { %752 = vtanh.f32 %v357_v26 }
  0xb1   : > { %754 = vtanh.f32 %v386_v27 }
  0xb2   : > { %756 = vtanh.f32 %v354_v25 }
  0xb3   : > { %758 = vtanh.f32 %v383_v29 }
  0xb4   : > { %760 = vtanh.f32 %v351_v30 }
  0xb5   : > { %762 = vtanh.f32 %v380_v31 }
  0xb6   : > { %v753_v34 = vpop.eup %752  ;;  %764 = vtanh.f32 %v348_v32 }
  0xb7   : > { %v755_v35 = vpop.eup %754  ;;  %766 = vtanh.f32 %v377_v33  ;;  %449 = vmatpush.msra.mxu2 %v753_v34 }
  0xb8   : > { %v757_v37 = vpop.eup %756  ;;  %478 = vmatpush.msra.mxu3 %v755_v35 }
  0xb9   : > { %v759_v38 = vpop.eup %758  ;;  %450 = vmatpush.msra.mxu2 %v757_v37 }
  0xba   : > { %v761_v39 = vpop.eup %760  ;;  %479 = vmatpush.msra.mxu3 %v759_v38 }
  0xbb   : > { %v763_v40 = vpop.eup %762  ;;  %451 = vmatpush.msra.mxu2 %v761_v39 }
  0xbc   : > { %v765_v42 = vpop.eup %764  ;;  %480 = vmatpush.msra.mxu3 %v763_v40 }
  0xbd   : > { %v767_v43 = vpop.eup %766  ;;  %452 = vmatpush.msra.mxu2 %v765_v42 }
  0xbe   : > { %481 = vmatpush.msra.mxu3 %v767_v43  ;;  %680 = vmatmul.msk.f32.vlgmr.msra.gmra.mxu2 %vm424_vm2, %v396_v41 }
  0xbf   : > { %684 = vmatmul.msk.f32.vlgmr.msra.gmra.mxu3 %vm424_vm2, %v396_v41 }
  0xc6   : > { %681 = vmatmul.msk.f32.gmra.mxu2 %vm424_vm2, %v397_v45 }
  0xc7   : > { %685 = vmatmul.msk.f32.gmra.mxu3 %vm424_vm2, %v397_v45 }
  0xce   : > { %682 = vmatmul.msk.f32.gmra.mxu2 %vm424_vm2, %v398_v47 }
  0xcf   : > { %686 = vmatmul.msk.f32.gmra.mxu3 %vm424_vm2, %v398_v47 }
  0xd6   : > { %683 = vmatmul.msk.f32.gmra.mxu2 %vm424_vm2, %v399_v48 }
  0xd7   : > { %687 = vmatmul.msk.f32.gmra.mxu3 %vm424_vm2, %v399_v48 }
 0x141   : > { %v454_v49 = vpop.f32.mrf.mxu2 }
 0x142   : > { %v483_v50 = vpop.f32.mrf.mxu3  ;;  %v455_v3 = vadd.f32 %v454_v49, %v407_v0 }
 0x143   : > { %v484_v6 = vadd.f32 %v483_v50, %v407_v0 }
 0x144   : > { %v495_v11 = vadd.f32 %v765_v42, %v455_v3 }
 0x145   : > { %v496_v12 = vadd.f32 %v767_v43, %v484_v6 }
 0x149   : > { %v457_v51 = vpop.f32.mrf.mxu2 }
 0x14a   : > { %v486_v52 = vpop.f32.mrf.mxu3  ;;  %v458_v61 = vadd.f32 %v457_v51, %v412_v58 }
 0x14b   : > { %v487_v1 = vadd.f32 %v486_v52, %v412_v58 }
 0x14c   : > { %v497_v9 = vadd.f32 %v761_v39, %v458_v61 }
 0x14d   : > { %v498_v10 = vadd.f32 %v763_v40, %v487_v1 }
 0x151   : > { %v460_v54 = vpop.f32.mrf.mxu2 }
 0x152   : > { %v489_v55 = vpop.f32.mrf.mxu3  ;;  %v461_v57 = vadd.f32 %v460_v54, %v417_v56 }
 0x153   : > { %v490_v59 = vadd.f32 %v489_v55, %v417_v56 }
 0x154   : > { %v499_v4 = vadd.f32 %v757_v37, %v461_v57 }
 0x155   : > { %v500_v7 = vadd.f32 %v759_v38, %v490_v59 }
 0x159   : > { %v463_v60 = vpop.f32.mrf.mxu2 }
 0x15a   : > { %v464_v62 = vadd.f32 %v463_v60, %v422_v53  ;;  %v492_v63 = vpop.f32.mrf.mxu3 }
 0x15b   : > { %v493_v2 = vadd.f32 %v492_v63, %v422_v53 }
 0x15c   : > { %v501_v5 = vadd.f32 %v753_v34, %v464_v62 }
 0x15d   : > { %v502_v8 = vadd.f32 %v755_v35, %v493_v2 }
 0x15e   : > { %768 = vtanh.f32 %v501_v5 }
 0x15f   : > { %770 = vtanh.f32 %v502_v8 }
 0x160   : > { %772 = vtanh.f32 %v499_v4 }
 0x161   : > { %774 = vtanh.f32 %v500_v7 }
 0x162   : > { %776 = vtanh.f32 %v497_v9 }
 0x163   : > { %778 = vtanh.f32 %v498_v10 }
 0x164   : > { %v769_v13 = vpop.eup %768  ;;  %780 = vtanh.f32 %v495_v11 }
 0x165   : > { %v771_v14 = vpop.eup %770  ;;  %782 = vtanh.f32 %v496_v12  ;;  %543 = vmatpush.msrb.mxu0 %v769_v13  ;;  %698 = vmatpush.msrb.mxu2 %v769_v13 }
 0x166   : > { %v773_v15 = vpop.eup %772  ;;  %566 = vmatpush.msrb.mxu1 %v771_v14  ;;  %702 = vmatpush.msrb.mxu3 %v771_v14 }
 0x167   : > { %v775_v16 = vpop.eup %774  ;;  %544 = vmatpush.msrb.mxu0 %v773_v15  ;;  %699 = vmatpush.msrb.mxu2 %v773_v15 }
 0x168   : > { %v777_v17 = vpop.eup %776  ;;  %567 = vmatpush.msrb.mxu1 %v775_v16  ;;  %703 = vmatpush.msrb.mxu3 %v775_v16 }
 0x169   : > { %v779_v18 = vpop.eup %778  ;;  %545 = vmatpush.msrb.mxu0 %v777_v17  ;;  %700 = vmatpush.msrb.mxu2 %v777_v17 }
 0x16a   : > { %v781_v19 = vpop.eup %780  ;;  %568 = vmatpush.msrb.mxu1 %v779_v18  ;;  %704 = vmatpush.msrb.mxu3 %v779_v18 }
 0x16b   : > { %v783_v22 = vpop.eup %782  ;;  %546 = vmatpush.msrb.mxu0 %v781_v19  ;;  %701 = vmatpush.msrb.mxu2 %v781_v19 }
 0x16c   : > { %569 = vmatpush.msrb.mxu1 %v783_v22  ;;  %705 = vmatpush.msrb.mxu3 %v783_v22 }
 0x16d   : > { %688 = vmatmul.msk.f32.vlgmr.msrb.gmra.mxu0 %vm424_vm2, %v511_v20  ;;  %689 = vmatmul.msk.f32.vlgmr.msrb.gmra.mxu2 %vm424_vm2, %v512_v21 }
 0x16e   : > { %690 = vmatmul.msk.f32.vlgmr.msrb.gmra.mxu1 %vm424_vm2, %v511_v20  ;;  %691 = vmatmul.msk.f32.vlgmr.msrb.gmra.mxu3 %vm424_vm2, %v512_v21 }
 0x1ea   : > { %v548_v24 = vpop.f32.mrf.mxu0 }
 0x1eb   : > { %v549_v25 = vadd.f32 %v548_v24, %v518_v23  ;;  %v571_v26 = vpop.f32.mrf.mxu1 }
 0x1ec   : > { %v572_v27 = vadd.f32 %v571_v26, %v518_v23 }
 0x1ed   : > { %784 = vtanh.f32 %v549_v25 }
 0x1ee   : > { %786 = vtanh.f32 %v572_v27 }
 0x1f0   : > { %v551_v29 = vpop.f32.mrf.mxu2 }
 0x1f1   : > { %v552_v30 = vadd.f32 %v551_v29, %v523_v28  ;;  %v574_v31 = vpop.f32.mrf.mxu3 }
 0x1f2   : > { %v575_v32 = vadd.f32 %v574_v31, %v523_v28 }
 0x1f3   : > { %v785_v33 = vpop.eup %784  ;;  %788 = vtanh.f32 %v552_v30 }
 0x1f4   : > { %v787_v34 = vpop.eup %786  ;;  %581 = vst [vmem:[%s272_s22] sm:$0xff] %v785_v33  ;;  %790 = vtanh.f32 %v575_v32 }
 0x1f5   : > { %582 = vst [vmem:[%s272_s22 + $0x8] sm:$0xff] %v787_v34 }
 0x1f9   : > { %v789_v35 = vpop.eup %788 }
 0x1fa   : > { %v791_v36 = vpop.eup %790  ;;  %583 = vst [vmem:[%s272_s22 + $0x10] sm:$0xff] %v789_v35 }
 0x1fb   : > { %584 = vst [vmem:[%s272_s22 + $0x18] sm:$0xff] %v791_v36 }
 0x1fc   : > { %819 = shalt.err (!%p816_p3)
}
 0x1fd   : > { %s857_s16 = smov 256   ;;  %s858_s19 = smov 512  }
 0x1fe   : > { %s859_s20 = smov 16  }
 0x1ff   : > { %706 = dma.vmem_to_hbm [thread:$0]  (%p938_p5), %s599_s23, 512, %s601_s29, %s586_s28, %s857_s16, %s858_s19, %s859_s20  }
 0x200 PF: > { %p712_p4 = scmp.ge.s32.totalorder %s854_s27, 2  ;;  %s615_s21 = sand.u32 1, %s842_s24  }
 0x201   : > { %s616_s22 = scalar_lea.sflag [#allocation3], %s615_s21 }
 0x202   : > { %p709_p7 = pnand %p712_p4, %p942_p6 }
 0x204   : > { %p710_p8 = pneg %p709_p7 }
 0x206   : > { %837 = dma.done.wait (%p710_p8), %s616_s22, 512  }
 0x207   : > { %839 = vsyncadd (%p710_p8), %s616_s22, 4294966784  ;;  %p17_p9 = scmp.ge.s32.totalorder %s925_s30, 4   ;;  %s1074_s24 = smov %s846_s25 }
 0x208   : > { %s1075_s25 = smov %s850_s26  ;;  %s1076_s26 = smov %s936_s10 }
 0x209   : > { %s1077_s27 = smov %s925_s30  ;;  %19 = sbr.rel (!%p17_p9) target bundleno = 3 (0x3), region = 83 }
 0x20e   :  { %622 = vsyncpa [#allocation3], 1 }
 0x20f   :  { %624 = vsyncpa [#allocation3 + $0x1], 1 }

</bundles_post_ra>
